<compile_context>
chip_gen: v7x
topology: tpu7x:2x2x1
jax: 0.10.0
libtpu: 0.0.40
codegen_flags: <defaults>
</compile_context>

<pallas_src>
import jax
import jax.numpy as jnp
from jax.experimental import pallas as pl
from jax.experimental.pallas import tpu as pltpu


def _lrelu(v, slope=0.05):
    return jnp.where(v >= 0, v, slope * v)


def _round_up(n, m):
    return ((n + m - 1) // m) * m


def trend_block_kernel(x_ref,
                       w1_ref, b1_ref,
                       w2_ref, b2_ref,
                       w3_ref, b3_ref,
                       w4_ref, b4_ref,
                       wc_ref,
                       out_ref):
    # 4-layer MLP with leaky-relu (Block.forward hot path)
    h = _lrelu(jnp.dot(x_ref[...], w1_ref[...],
                       preferred_element_type=jnp.float32) + b1_ref[...])
    h = _lrelu(jnp.dot(h, w2_ref[...],
                       preferred_element_type=jnp.float32) + b2_ref[...])
    h = _lrelu(jnp.dot(h, w3_ref[...],
                       preferred_element_type=jnp.float32) + b3_ref[...])
    h = _lrelu(jnp.dot(h, w4_ref[...],
                       preferred_element_type=jnp.float32) + b4_ref[...])
    # fused (theta -> trend basis) projection: one matmul, one lane-dense store
    out_ref[...] = jnp.dot(h, wc_ref[...], preferred_element_type=jnp.float32)


def trend_block_forward(x, params, t_back, t_fore, *, tile_b=512):
    """x: [B, backcastLength] f32 -> (backcast [B, Lb], forecast [B, Lf])."""
    B, Lb = x.shape
    Lf = t_fore.shape[1]
    L = Lb + Lf

    # Fold the shared (bias-free) theta projection into the trend bases:
    #   theta @ [Tb | Tf] == h @ (wt @ [Tb | Tf])
    w_comb = jnp.dot(params["wt"], jnp.concatenate([t_back, t_fore], axis=1))

    # Batch tile: multiple of 8 sublanes; capped so double-buffered activation
    # tiles stay tiny relative to the v7x 32/64 MiB scoped-VMEM budget.
    tile_b = max(8, min(tile_b, _round_up(B, 8)))
    Bp = _round_up(B, tile_b)
    if Bp != B:
        x = jnp.pad(x, ((0, Bp - B), (0, 0)))

    grid = (Bp // tile_b,)

    def const_spec(arr):
        # full-extent block, same block index every grid step -> stays VMEM-resident
        return pl.BlockSpec(arr.shape, lambda i: (0, 0))

    out = pl.pallas_call(
        trend_block_kernel,
        out_shape=jax.ShapeDtypeStruct((Bp, L), jnp.float32),
        grid=grid,
        in_specs=[
            pl.BlockSpec((tile_b, Lb), lambda i: (i, 0)),   # activations: tiled over batch
            const_spec(params["w1"]), const_spec(params["b1"]),
            const_spec(params["w2"]), const_spec(params["b2"]),
            const_spec(params["w3"]), const_spec(params["b3"]),
            const_spec(params["w4"]), const_spec(params["b4"]),
            const_spec(w_comb),
        ],
        out_specs=pl.BlockSpec((tile_b, L), lambda i: (i, 0)),
        compiler_params=pltpu.CompilerParams(
            dimension_semantics=("parallel",)),
    )(x,
      params["w1"], params["b1"],
      params["w2"], params["b2"],
      params["w3"], params["b3"],
      params["w4"], params["b4"],
      w_comb)

    return out[:B, :Lb], out[:B, Lb:]


def make_params(key, backcast_length, units, thetas_dim):
    """Deterministic synthetic parameters (shapes from Block.__init__/postInit).
    Weights stored as [in_features, out_features] so the kernel computes x @ W + b."""
    ks = jax.random.split(key, 9)

    def lin(kw, kb, fan_in, fan_out, bias=True):
        scale = 1.0 / jnp.sqrt(fan_in)
        w = jax.random.uniform(kw, (fan_in, fan_out), jnp.float32, -scale, scale)
        b = (jax.random.uniform(kb, (1, fan_out), jnp.float32, -scale, scale)
             if bias else None)
        return w, b

    w1, b1 = lin(ks[0], ks[1], backcast_length, units)
    w2, b2 = lin(ks[2], ks[3], units, units)
    w3, b3 = lin(ks[4], ks[5], units, units)
    w4, b4 = lin(ks[6], ks[7], units, units)
    # shareThetas=True -> one bias-free Linear(units, thetasDim) used for both heads
    wt, _ = lin(ks[8], ks[8], units, thetas_dim, bias=False)
    return dict(w1=w1, b1=b1, w2=w2, b2=b2, w3=w3, b3=b3, w4=w4, b4=b4, wt=wt)


def trend_basis(horizon, p):
    """T[i, t] = (t / horizon) ** i, shape [p, horizon]  (TrendBlock.trendModel)."""
    ls = jnp.arange(horizon, dtype=jnp.float32) / horizon
    return jnp.stack([ls ** i for i in range(p)], axis=0)


def reference_forward(x, params, t_back, t_fore):
    """Plain-JAX reference with the ORIGINAL associativity (theta first, then basis)."""
    h = _lrelu(x @ params["w1"] + params["b1"])
    h = _lrelu(h @ params["w2"] + params["b2"])
    h = _lrelu(h @ params["w3"] + params["b3"])
    h = _lrelu(h @ params["w4"] + params["b4"])
    theta = h @ params["wt"]
    return theta @ t_back, theta @ t_fore


if __name__ == "__main__":
    # TrendBlock(units=32, thetasDim=4, shareThetas=True);
    # postInit(backcastLength=16, forecastLength=8)
    batch = 8
    backcast_length = 16
    forecast_length = 8
    units = 32
    thetas_dim = 4  # must be <= 4 for TrendBlock

    key = jax.random.PRNGKey(0)
    kx, kp = jax.random.split(key)
    x = jax.random.normal(kx, (batch, backcast_length), jnp.float32)
    params = make_params(kp, backcast_length, units, thetas_dim)
    t_back = trend_basis(backcast_length, thetas_dim)
    t_fore = trend_basis(forecast_length, thetas_dim)

    backcast, forecast = trend_block_forward(x, params, t_back, t_fore)
    jax.block_until_ready((backcast, forecast))

    # correctness check vs plain-JAX reference (fusion reassociates matmuls,
    # shifting results only at the float32 rounding level)
    rb, rf = reference_forward(x, params, t_back, t_fore)
    assert backcast.shape == (batch, backcast_length)
    assert forecast.shape == (batch, forecast_length)
    assert jnp.allclose(backcast, rb, atol=1e-4, rtol=1e-4)
    assert jnp.allclose(forecast, rf, atol=1e-4, rtol=1e-4)

    print("KERNEL_OK")
</pallas_src>

<mosaic_0001>
module attributes {stable_mosaic.version = 11 : i64} {
  func.func @trend_block_kernel(%arg0: i32, %arg1: memref<8x16xf32, #tpu.memory_space<vmem>>, %arg2: memref<16x32xf32, #tpu.memory_space<vmem>>, %arg3: memref<1x32xf32, #tpu.memory_space<vmem>>, %arg4: memref<32x32xf32, #tpu.memory_space<vmem>>, %arg5: memref<1x32xf32, #tpu.memory_space<vmem>>, %arg6: memref<32x32xf32, #tpu.memory_space<vmem>>, %arg7: memref<1x32xf32, #tpu.memory_space<vmem>>, %arg8: memref<32x32xf32, #tpu.memory_space<vmem>>, %arg9: memref<1x32xf32, #tpu.memory_space<vmem>>, %arg10: memref<32x24xf32, #tpu.memory_space<vmem>>, %arg11: memref<8x24xf32, #tpu.memory_space<vmem>>) attributes {dimension_semantics = [#tpu.dimension_semantics<parallel>], iteration_bounds = array<i64: 1>, scalar_prefetch = 0 : i64, scratch_operands = 0 : i64, tpu.core_type = #tpu.core_type<tc>, window_params = [{transform_indices = @transform_0, window_bounds = array<i64: 8, 16>}, {pipeline_mode = #tpu.pipeline_mode<synchronous>, transform_indices = @transform_1, window_bounds = array<i64: 16, 32>}, {pipeline_mode = #tpu.pipeline_mode<synchronous>, transform_indices = @transform_2, window_bounds = array<i64: 1, 32>}, {pipeline_mode = #tpu.pipeline_mode<synchronous>, transform_indices = @transform_3, window_bounds = array<i64: 32, 32>}, {pipeline_mode = #tpu.pipeline_mode<synchronous>, transform_indices = @transform_4, window_bounds = array<i64: 1, 32>}, {pipeline_mode = #tpu.pipeline_mode<synchronous>, transform_indices = @transform_5, window_bounds = array<i64: 32, 32>}, {pipeline_mode = #tpu.pipeline_mode<synchronous>, transform_indices = @transform_6, window_bounds = array<i64: 1, 32>}, {pipeline_mode = #tpu.pipeline_mode<synchronous>, transform_indices = @transform_7, window_bounds = array<i64: 32, 32>}, {pipeline_mode = #tpu.pipeline_mode<synchronous>, transform_indices = @transform_8, window_bounds = array<i64: 1, 32>}, {pipeline_mode = #tpu.pipeline_mode<synchronous>, transform_indices = @transform_9, window_bounds = array<i64: 32, 24>}, {transform_indices = @transform_10, window_bounds = array<i64: 8, 24>}]} {
    %c0 = arith.constant 0 : index
    %c0_0 = arith.constant 0 : index
    %0 = vector.load %arg1[%c0, %c0_0] : memref<8x16xf32, #tpu.memory_space<vmem>>, vector<8x16xf32>
    %c0_1 = arith.constant 0 : index
    %c0_2 = arith.constant 0 : index
    %1 = vector.load %arg2[%c0_1, %c0_2] : memref<16x32xf32, #tpu.memory_space<vmem>>, vector<16x32xf32>
    %cst = arith.constant dense<0.000000e+00> : vector<8x32xf32>
    %2 = tpu.matmul %0, %1, %cst {dimension_numbers = #tpu.dot_dimension_numbers<[1], [0], [0], [1], [0, 0, 1, 1], [], []>} : vector<8x16xf32>, vector<16x32xf32>, vector<8x32xf32> -> vector<8x32xf32>
    %c0_3 = arith.constant 0 : index
    %c0_4 = arith.constant 0 : index
    %3 = vector.load %arg3[%c0_3, %c0_4] : memref<1x32xf32, #tpu.memory_space<vmem>>, vector<1x32xf32>
    %4 = vector.broadcast %3 : vector<1x32xf32> to vector<8x32xf32>
    %5 = arith.addf %2, %4 : vector<8x32xf32>
    %cst_5 = arith.constant 0.000000e+00 : f32
    %6 = vector.broadcast %cst_5 : f32 to vector<8x32xf32>
    %7 = arith.cmpf oge, %5, %6 : vector<8x32xf32>
    %cst_6 = arith.constant 5.000000e-02 : f32
    %8 = vector.broadcast %cst_6 : f32 to vector<8x32xf32>
    %9 = arith.mulf %8, %5 : vector<8x32xf32>
    %10 = arith.select %7, %5, %9 : vector<8x32xi1>, vector<8x32xf32>
    %c0_7 = arith.constant 0 : index
    %c0_8 = arith.constant 0 : index
    %11 = vector.load %arg4[%c0_7, %c0_8] : memref<32x32xf32, #tpu.memory_space<vmem>>, vector<32x32xf32>
    %cst_9 = arith.constant dense<0.000000e+00> : vector<8x32xf32>
    %12 = tpu.matmul %10, %11, %cst_9 {dimension_numbers = #tpu.dot_dimension_numbers<[1], [0], [0], [1], [0, 0, 1, 1], [], []>} : vector<8x32xf32>, vector<32x32xf32>, vector<8x32xf32> -> vector<8x32xf32>
    %c0_10 = arith.constant 0 : index
    %c0_11 = arith.constant 0 : index
    %13 = vector.load %arg5[%c0_10, %c0_11] : memref<1x32xf32, #tpu.memory_space<vmem>>, vector<1x32xf32>
    %14 = vector.broadcast %13 : vector<1x32xf32> to vector<8x32xf32>
    %15 = arith.addf %12, %14 : vector<8x32xf32>
    %cst_12 = arith.constant 0.000000e+00 : f32
    %16 = vector.broadcast %cst_12 : f32 to vector<8x32xf32>
    %17 = arith.cmpf oge, %15, %16 : vector<8x32xf32>
    %cst_13 = arith.constant 5.000000e-02 : f32
    %18 = vector.broadcast %cst_13 : f32 to vector<8x32xf32>
    %19 = arith.mulf %18, %15 : vector<8x32xf32>
    %20 = arith.select %17, %15, %19 : vector<8x32xi1>, vector<8x32xf32>
    %c0_14 = arith.constant 0 : index
    %c0_15 = arith.constant 0 : index
    %21 = vector.load %arg6[%c0_14, %c0_15] : memref<32x32xf32, #tpu.memory_space<vmem>>, vector<32x32xf32>
    %cst_16 = arith.constant dense<0.000000e+00> : vector<8x32xf32>
    %22 = tpu.matmul %20, %21, %cst_16 {dimension_numbers = #tpu.dot_dimension_numbers<[1], [0], [0], [1], [0, 0, 1, 1], [], []>} : vector<8x32xf32>, vector<32x32xf32>, vector<8x32xf32> -> vector<8x32xf32>
    %c0_17 = arith.constant 0 : index
    %c0_18 = arith.constant 0 : index
    %23 = vector.load %arg7[%c0_17, %c0_18] : memref<1x32xf32, #tpu.memory_space<vmem>>, vector<1x32xf32>
    %24 = vector.broadcast %23 : vector<1x32xf32> to vector<8x32xf32>
    %25 = arith.addf %22, %24 : vector<8x32xf32>
    %cst_19 = arith.constant 0.000000e+00 : f32
    %26 = vector.broadcast %cst_19 : f32 to vector<8x32xf32>
    %27 = arith.cmpf oge, %25, %26 : vector<8x32xf32>
    %cst_20 = arith.constant 5.000000e-02 : f32
    %28 = vector.broadcast %cst_20 : f32 to vector<8x32xf32>
    %29 = arith.mulf %28, %25 : vector<8x32xf32>
    %30 = arith.select %27, %25, %29 : vector<8x32xi1>, vector<8x32xf32>
    %c0_21 = arith.constant 0 : index
    %c0_22 = arith.constant 0 : index
    %31 = vector.load %arg8[%c0_21, %c0_22] : memref<32x32xf32, #tpu.memory_space<vmem>>, vector<32x32xf32>
    %cst_23 = arith.constant dense<0.000000e+00> : vector<8x32xf32>
    %32 = tpu.matmul %30, %31, %cst_23 {dimension_numbers = #tpu.dot_dimension_numbers<[1], [0], [0], [1], [0, 0, 1, 1], [], []>} : vector<8x32xf32>, vector<32x32xf32>, vector<8x32xf32> -> vector<8x32xf32>
    %c0_24 = arith.constant 0 : index
    %c0_25 = arith.constant 0 : index
    %33 = vector.load %arg9[%c0_24, %c0_25] : memref<1x32xf32, #tpu.memory_space<vmem>>, vector<1x32xf32>
    %34 = vector.broadcast %33 : vector<1x32xf32> to vector<8x32xf32>
    %35 = arith.addf %32, %34 : vector<8x32xf32>
    %cst_26 = arith.constant 0.000000e+00 : f32
    %36 = vector.broadcast %cst_26 : f32 to vector<8x32xf32>
    %37 = arith.cmpf oge, %35, %36 : vector<8x32xf32>
    %cst_27 = arith.constant 5.000000e-02 : f32
    %38 = vector.broadcast %cst_27 : f32 to vector<8x32xf32>
    %39 = arith.mulf %38, %35 : vector<8x32xf32>
    %40 = arith.select %37, %35, %39 : vector<8x32xi1>, vector<8x32xf32>
    %c0_28 = arith.constant 0 : index
    %c0_29 = arith.constant 0 : index
    %41 = vector.load %arg10[%c0_28, %c0_29] : memref<32x24xf32, #tpu.memory_space<vmem>>, vector<32x24xf32>
    %cst_30 = arith.constant dense<0.000000e+00> : vector<8x24xf32>
    %42 = tpu.matmul %40, %41, %cst_30 {dimension_numbers = #tpu.dot_dimension_numbers<[1], [0], [0], [1], [0, 0, 1, 1], [], []>} : vector<8x32xf32>, vector<32x24xf32>, vector<8x24xf32> -> vector<8x24xf32>
    %c0_31 = arith.constant 0 : index
    %c0_32 = arith.constant 0 : index
    %43 = vector.load %arg11[%c0_31, %c0_32] : memref<8x24xf32, #tpu.memory_space<vmem>>, vector<8x24xf32>
    tpu.vector_store %arg11[%c0_31, %c0_32], %42 {strides = array<i32>} : memref<8x24xf32, #tpu.memory_space<vmem>>, vector<8x24xf32>,
    return
  }
  func.func @transform_0(%arg0: i32) -> (i32, i32) {
    %c0_i32 = arith.constant 0 : i32
    %c0_i32_0 = arith.constant 0 : i32
    return %arg0, %c0_i32 : i32, i32
  }
  func.func @transform_1(%arg0: i32) -> (i32, i32) {
    %c0_i32 = arith.constant 0 : i32
    %c0_i32_0 = arith.constant 0 : i32
    %c0_i32_1 = arith.constant 0 : i32
    return %c0_i32, %c0_i32_0 : i32, i32
  }
  func.func @transform_2(%arg0: i32) -> (i32, i32) {
    %c0_i32 = arith.constant 0 : i32
    %c0_i32_0 = arith.constant 0 : i32
    %c0_i32_1 = arith.constant 0 : i32
    return %c0_i32, %c0_i32_0 : i32, i32
  }
  func.func @transform_3(%arg0: i32) -> (i32, i32) {
    %c0_i32 = arith.constant 0 : i32
    %c0_i32_0 = arith.constant 0 : i32
    %c0_i32_1 = arith.constant 0 : i32
    return %c0_i32, %c0_i32_0 : i32, i32
  }
  func.func @transform_4(%arg0: i32) -> (i32, i32) {
    %c0_i32 = arith.constant 0 : i32
    %c0_i32_0 = arith.constant 0 : i32
    %c0_i32_1 = arith.constant 0 : i32
    return %c0_i32, %c0_i32_0 : i32, i32
  }
  func.func @transform_5(%arg0: i32) -> (i32, i32) {
    %c0_i32 = arith.constant 0 : i32
    %c0_i32_0 = arith.constant 0 : i32
    %c0_i32_1 = arith.constant 0 : i32
    return %c0_i32, %c0_i32_0 : i32, i32
  }
  func.func @transform_6(%arg0: i32) -> (i32, i32) {
    %c0_i32 = arith.constant 0 : i32
    %c0_i32_0 = arith.constant 0 : i32
    %c0_i32_1 = arith.constant 0 : i32
    return %c0_i32, %c0_i32_0 : i32, i32
  }
  func.func @transform_7(%arg0: i32) -> (i32, i32) {
    %c0_i32 = arith.constant 0 : i32
    %c0_i32_0 = arith.constant 0 : i32
    %c0_i32_1 = arith.constant 0 : i32
    return %c0_i32, %c0_i32_0 : i32, i32
  }
  func.func @transform_8(%arg0: i32) -> (i32, i32) {
    %c0_i32 = arith.constant 0 : i32
    %c0_i32_0 = arith.constant 0 : i32
    %c0_i32_1 = arith.constant 0 : i32
    return %c0_i32, %c0_i32_0 : i32, i32
  }
  func.func @transform_9(%arg0: i32) -> (i32, i32) {
    %c0_i32 = arith.constant 0 : i32
    %c0_i32_0 = arith.constant 0 : i32
    %c0_i32_1 = arith.constant 0 : i32
    return %c0_i32, %c0_i32_0 : i32, i32
  }
  func.func @transform_10(%arg0: i32) -> (i32, i32) {
    %c0_i32 = arith.constant 0 : i32
    %c0_i32_0 = arith.constant 0 : i32
    return %arg0, %c0_i32 : i32, i32
  }
}

</mosaic_0001>

<bundles_post_ra>
// kernel: tpu_custom_call.1
= control target key start
LH: loop header
LB: loop body
LE: loop exit
PB: predicated region body
PF: predicated region fallthrough
CT: control target
= control target key end

     0   :  { %15 = vsyncpa [#allocation3], 0  ;;  %s1002_s0 = inlined_call_operand.hbm [shape: f32[8,16], index: 0, kind: input, shape index: {}]   ;;  %s1003_s1 = inlined_call_operand.hbm [shape: f32[16,32], index: 1, kind: input, shape index: {}]   ;;  %s1004_s2 = inlined_call_operand.vmem [shape: f32[1,32], index: 2, kind: input, shape index: {}]   ;;  %s1005_s3 = inlined_call_operand.vmem [shape: f32[32,32], index: 3, kind: input, shape index: {}]   ;;  %s1006_s4 = inlined_call_operand.vmem [shape: f32[1,32], index: 4, kind: input, shape index: {}]   ;;  %s1007_s5 = inlined_call_operand.vmem [shape: f32[32,32], index: 5, kind: input, shape index: {}]   ;;  %s1008_s6 = inlined_call_operand.hbm [shape: f32[1,32], index: 6, kind: input, shape index: {}]   ;;  %s1009_s7 = inlined_call_operand.hbm [shape: f32[32,32], index: 7, kind: input, shape index: {}]   ;;  %s1010_s8 = inlined_call_operand.hbm [shape: f32[1,32], index: 8, kind: input, shape index: {}]   ;;  %s1011_s9 = inlined_call_operand.vmem [shape: f32[32,24], index: 9, kind: input, shape index: {}]   ;;  %s1012_s10 = inlined_call_operand.hbm [shape: f32[8,24], index: 10, kind: output, shape index: {}]  }
   0x1   :  { %16 = vsyncpa [#allocation6], 0 }
   0x2   :  { %17 = vsyncpa [#allocation9], 0 }
   0x3   :  { %18 = vsyncpa [#allocation4], 0  ;;  %s804_s13 = smov [#allocation5]   ;;  %s664_s17 = scalar_lea.hbm %s1003_s1, 256 }
   0x4   :  { %s34_s14 = sshll.u32 %s804_s13, 4  ;;  %p665_p0 = scmp.ne.s32.totalorder %s1003_s1, %s664_s17  ;;  %s35_s14 = int_to_ptr.vmem [resolvable:$true] %s34_s14 }
   0x5   :  { %p668_p1 = scmp.lt.u32.totalorder %s664_s17, %s1003_s1 }
   0x7   :  { %p670_p2 = pnand %p668_p1, %p665_p0 }
   0x9   :  { %673 = shalt.err (!%p670_p2)
}
   0xa   :  { %s674_s22 = scalar_lea.vmem %s35_s14, 256  ;;  %p679_p4 = scmp.lt.s32.totalorder %s35_s14, %s35_s14 }
   0xb   :  { %p675_p3 = scmp.ne.s32.totalorder %s35_s14, %s674_s22  ;;  %p680_p5 = scmp.lt.s32.totalorder %s674_s22, %s674_s22 }
   0xd   :  { %p681_p6 = por %p680_p5, %p679_p4 }
   0xf   :  { %p682_p7 = pnand %p681_p6, %p675_p3 }
  0x11   :  { %685 = shalt.err (!%p682_p7)
}
  0x12   :  { %s805_s23 = smov 128   ;;  %s806_s24 = smov 8  }
  0x13   :  { %40 = dma.hbm_to_vmem [thread:$0]  %s1003_s1, 256, %s35_s14, [#allocation6], %s805_s23, %s805_s23, %s806_s24  }
  0x14   :  { %s807_s27 = smov [#allocation8]   ;;  %s808_s29 = smov [#allocation2]  }
  0x15   :  { %s64_s28 = sshll.u32 %s807_s27, 4  ;;  %s25_s30 = sshll.u32 %s808_s29, 4  ;;  %s65_s28 = int_to_ptr.vmem [resolvable:$true] %s64_s28  ;;  %s26_s30 = int_to_ptr.vmem [resolvable:$true] %s25_s30 }
  0x16   :  { %s686_s13 = scalar_lea.hbm %s1009_s7, 512 }
  0x17   :  { %p687_p8 = scmp.ne.s32.totalorder %s1009_s7, %s686_s13  ;;  %p690_p9 = scmp.lt.u32.totalorder %s686_s13, %s1009_s7 }
  0x19   :  { %p692_p10 = pnand %p690_p9, %p687_p8 }
  0x1b   :  { %695 = shalt.err (!%p692_p10)
}
  0x1c   :  { %s696_s1 = scalar_lea.vmem %s65_s28, 512  ;;  %p701_p12 = scmp.lt.s32.totalorder %s65_s28, %s65_s28 }
  0x1d   :  { %p697_p11 = scmp.ne.s32.totalorder %s65_s28, %s696_s1  ;;  %p702_p13 = scmp.lt.s32.totalorder %s696_s1, %s696_s1 }
  0x1f   :  { %p703_p0 = por %p702_p13, %p701_p12 }
  0x21   :  { %p704_p1 = pnand %p703_p0, %p697_p11 }
  0x23   :  { %707 = shalt.err (!%p704_p1)
}
  0x24   :  { %70 = dma.hbm_to_vmem [thread:$0]  %s1009_s7, 512, %s65_s28, [#allocation9], %s805_s23, %s805_s23, %s806_s24  }
  0x25   :  { %s708_s22 = scalar_lea.hbm %s1002_s0, 128 }
  0x26   :  { %p709_p2 = scmp.ne.s32.totalorder %s1002_s0, %s708_s22  ;;  %p712_p3 = scmp.lt.u32.totalorder %s708_s22, %s1002_s0 }
  0x28   :  { %p714_p4 = pnand %p712_p3, %p709_p2 }
  0x2a   :  { %717 = shalt.err (!%p714_p4)
}
  0x2b   :  { %s718_s11 = scalar_lea.vmem %s26_s30, 128  ;;  %p723_p6 = scmp.lt.s32.totalorder %s26_s30, %s26_s30 }
  0x2c   :  { %p719_p5 = scmp.ne.s32.totalorder %s26_s30, %s718_s11  ;;  %p724_p7 = scmp.lt.s32.totalorder %s718_s11, %s718_s11 }
  0x2e   :  { %p725_p8 = por %p724_p7, %p723_p6 }
  0x30   :  { %p726_p9 = pnand %p725_p8, %p719_p5 }
  0x32   :  { %729 = shalt.err (!%p726_p9)
}
  0x33   :  { %28 = dma.hbm_to_vmem [thread:$0]  %s1002_s0, 128, %s26_s30, [#allocation3]  }
  0x34   :  { %s809_s24 = smov [#allocation7]   ;;  %s810_s12 = smov [#allocation10]  }
  0x35   :  { %s55_s28 = sshll.u32 %s809_s24, 4  ;;  %s77_s13 = sshll.u32 %s810_s12, 4  ;;  %s56_s28 = int_to_ptr.vmem [resolvable:$true] %s55_s28  ;;  %s78_s13 = int_to_ptr.vmem [resolvable:$true] %s77_s13 }
  0x36   :  { %s730_s17 = scalar_lea.hbm %s1008_s6, 16 }
  0x37   :  { %p731_p10 = scmp.ne.s32.totalorder %s1008_s6, %s730_s17  ;;  %p734_p11 = scmp.lt.u32.totalorder %s730_s17, %s1008_s6 }
  0x39   :  { %p736_p12 = pnand %p734_p11, %p731_p10 }
  0x3b   :  { %739 = shalt.err (!%p736_p12)
}
  0x3c   :  { %s740_s0 = scalar_lea.vmem %s56_s28, 16  ;;  %s744_s30 = scalar_lea.vmem %s56_s28, 32 }
  0x3d   :  { %p741_p13 = scmp.ne.s32.totalorder %s56_s28, %s740_s0  ;;  %p745_p0 = scmp.lt.s32.totalorder %s56_s28, %s56_s28 }
  0x3e   :  { %p746_p1 = scmp.lt.s32.totalorder %s744_s30, %s740_s0 }
  0x40   :  { %p747_p2 = por %p746_p1, %p745_p0 }
  0x42   :  { %p748_p3 = pnand %p747_p2, %p741_p13 }
  0x44   :  { %751 = shalt.err (!%p748_p3)
}
  0x45   :  { %58 = dma.hbm_to_vmem [thread:$0]  %s1008_s6, 16, %s56_s28, [#allocation6]  }
  0x46   :  { %s752_s26 = scalar_lea.hbm %s1010_s8, 16 }
  0x47   :  { %p753_p4 = scmp.ne.s32.totalorder %s1010_s8, %s752_s26  ;;  %p756_p5 = scmp.lt.u32.totalorder %s752_s26, %s1010_s8 }
  0x49   :  { %p758_p6 = pnand %p756_p5, %p753_p4 }
  0x4b   :  { %761 = shalt.err (!%p758_p6)
}
  0x4c   :  { %s762_s23 = scalar_lea.vmem %s78_s13, 16  ;;  %s766_s24 = scalar_lea.vmem %s78_s13, 32 }
  0x4d   :  { %p763_p7 = scmp.ne.s32.totalorder %s78_s13, %s762_s23  ;;  %p767_p8 = scmp.lt.s32.totalorder %s78_s13, %s78_s13 }
  0x4e   :  { %p768_p9 = scmp.lt.s32.totalorder %s766_s24, %s762_s23 }
  0x50   :  { %p769_p10 = por %p768_p9, %p767_p8 }
  0x52   :  { %p770_p11 = pnand %p769_p10, %p763_p7 }
  0x54   :  { %773 = shalt.err (!%p770_p11)
}
  0x55   :  { %80 = dma.hbm_to_vmem [thread:$0]  %s1010_s8, 16, %s78_s13, [#allocation9]  }
  0x56   :  { %796 = dma.done.wait [#allocation3], 128  }
  0x57   :  { %797 = vsyncadd [#allocation3], 4294967168 }
  0x58   :  { %798 = dma.done.wait [#allocation6], 272  }
  0x59   :  { %799 = vsyncadd [#allocation6], 4294967024 }
  0x5a   :  { %800 = dma.done.wait [#allocation9], 528  }
  0x5b   :  { %801 = vsyncadd [#allocation9], 4294966768  ;;  %v811_v0 = vmov 0.0|0.0   ;;  %vm812_vm0 = vmmov 0   ;;  %v813_v1 = vmov 0.0   ;;  %v99_v2 = vld [vmem:[#allocation5] sm:$0xff] }
  0x5c   :  { %626 = vmatprep.subr.bf16.mxu0 %v811_v0  ;;  %579 = vmatprep.mubr.msk.f32.mxu0 %vm812_vm0, %v813_v1  ;;  %v100_v3 = vld [vmem:[#allocation5 + $0x8] sm:$0xff]  ;;  %v185_v5 = vld [vmem:[%s1005_s3] sm:$0xff]  ;;  %v186_v6 = vld [vmem:[%s1005_s3 + $0x8] sm:$0xff]  ;;  %vm108_vm1 = vcmask 130048   ;;  %vm196_vm3 = vcmask 261120   ;;  %s814_s28 = smov [#allocation11]  }
  0x5d   :  { %629 = vmatprep.subr.bf16.mxu1 %v811_v0  ;;  %590 = vmatprep.mubr.msk.f32.mxu1 %vm812_vm0, %v813_v1  ;;  %v627_v4 = vpack.c.bf16 %v100_v3, %v99_v2  ;;  %v630_v7 = vpack.c.bf16 %v186_v6, %v185_v5  ;;  %v98_v8 = vld [vmem:[#allocation2] sm:$0xff]  ;;  %v187_v9 = vld [vmem:[%s1005_s3 + $0x10] sm:$0xff]  ;;  %v188_v10 = vld [vmem:[%s1005_s3 + $0x18] sm:$0xff]  ;;  %s532_s8 = sshll.u32 %s814_s28, 4  ;;  %vm524_vm7 = vcmask 195584   ;;  %s533_s8 = int_to_ptr.vmem [resolvable:$true] %s532_s8 }
  0x5e   :  { %v633_v11 = vpack.c.bf16 %v188_v10, %v187_v9  ;;  %v273_v12 = vld [vmem:[%s1007_s5] sm:$0xff]  ;;  %v274_v13 = vld [vmem:[%s1007_s5 + $0x8] sm:$0xff]  ;;  %v275_v21 = vld [vmem:[%s1007_s5 + $0x10] sm:$0xff]  ;;  %s774_s12 = scalar_lea.vmem %s533_s8, 128  ;;  %p779_p13 = scmp.lt.s32.totalorder %s533_s8, %s533_s8 }
  0x5f   :  { %628 = vmatpush3.bf16.msra.mxu0 %v627_v4  ;;  %631 = vmatpush3.bf16.msra.mxu1 %v630_v7  ;;  %v636_v14 = vpack.c.bf16 %v274_v13, %v273_v12  ;;  %v543_v15 = vld [vmem:[%s1004_s2] ss:$0 sm:$0xff]  ;;  %v276_v22 = vld [vmem:[%s1007_s5 + $0x18] sm:$0xff]  ;;  %v361_v25 = vld [vmem:[#allocation8 + $0x8] sm:$0xff]  ;;  %p775_p12 = scmp.ne.s32.totalorder %s533_s8, %s774_s12  ;;  %p780_p0 = scmp.lt.s32.totalorder %s774_s12, %s774_s12 }
  0x60   :  { %635 = vmatprep.subr.bf16.mxu0 %v811_v0  ;;  %632 = vmatprep.subr.bf16.mxu1 %v811_v0  ;;  %v639_v23 = vpack.c.bf16 %v276_v22, %v275_v21  ;;  %v360_v24 = vld [vmem:[#allocation8] sm:$0xff]  ;;  %v362_v33 = vld [vmem:[#allocation8 + $0x10] sm:$0xff]  ;;  %v363_v34 = vld [vmem:[#allocation8 + $0x18] sm:$0xff] }
  0x61   :  { %v642_v26 = vpack.c.bf16 %v361_v25, %v360_v24  ;;  %v545_v27 = vld [vmem:[%s1006_s4] ss:$0 sm:$0xff]  ;;  %v645_v35 = vpack.c.bf16 %v363_v34, %v362_v33  ;;  %v448_v37 = vld [vmem:[%s1011_s9 + $0x8] sm:$0xff]  ;;  %v547_v39 = vld [vmem:[#allocation7] ss:$0 sm:$0xff]  ;;  %p781_p1 = por %p780_p0, %p779_p13 }
  0x62   :  { %580 = vmatmul.mubr.msk.f32.vlgmr.msra.gmra.mrb[0].mxu0 %vm108_vm1, %v98_v8  ;;  %v447_v36 = vld [vmem:[%s1011_s9] sm:$0xff]  ;;  %v449_v45 = vld [vmem:[%s1011_s9 + $0x10] sm:$0xff]  ;;  %v450_v46 = vld [vmem:[%s1011_s9 + $0x18] sm:$0xff] }
  0x63   :  { %601 = vmatprep.mubr.msk.f32.mxu0 %vm812_vm0, %v813_v1  ;;  %634 = vmatpush3.bf16.msra.mxu1 %v633_v11  ;;  %v648_v38 = vpack.c.bf16 %v448_v37, %v447_v36  ;;  %v651_v47 = vpack.c.bf16 %v450_v46, %v449_v45  ;;  %v549_v48 = vld [vmem:[#allocation10] ss:$0 sm:$0xff]  ;;  %p782_p2 = pnand %p781_p1, %p775_p12 }
  0x64   :  { %641 = vmatprep.subr.bf16.mxu1 %v811_v0  ;;  %637 = vmatpush3.bf16.msra.mxu0 %v636_v14 }
  0x65   :  { %638 = vmatprep.subr.bf16.mxu0 %v811_v0 }
  0x68   :  { %640 = vmatpush3.bf16.msra.mxu0 %v639_v23 }
  0x69   :  { %647 = vmatprep.subr.bf16.mxu0 %v811_v0 }
 0x135   :  { %v178_v16 = vpop.f32.mrb[0].mxu0 }
 0x136   :  { %v179_v17 = vadd.f32 %v543_v15, %v178_v16  ;;  %v581_v18 = vpop.f32.mrb[1].mxu0 }
 0x138   :  { %vm182_vm2 = vcmp.ge.f32.partialorder %v179_v17, 0.0  ;;  %v183_v19 = vmul.f32 0.05, %v179_v17 }
 0x13a   :  { %v184_v20 = vsel %vm182_vm2, %v179_v17, %v183_v19 }
 0x13b   :  { %591 = vmatmul.mubr.msk.f32.vlgmr.msra.gmra.mrb[0].mxu1 %vm196_vm3, %v184_v20 }
 0x13c   :  { %612 = vmatprep.mubr.msk.f32.mxu1 %vm812_vm0, %v813_v1  ;;  %643 = vmatpush3.bf16.msra.mxu1 %v642_v26 }
 0x13d   :  { %644 = vmatprep.subr.bf16.mxu1 %v811_v0 }
 0x140   :  { %646 = vmatpush3.bf16.msra.mxu1 %v645_v35 }
 0x20e   :  { %v266_v28 = vpop.f32.mrb[0].mxu1 }
 0x20f   :  { %v267_v29 = vadd.f32 %v545_v27, %v266_v28  ;;  %v592_v30 = vpop.f32.mrb[1].mxu1 }
 0x211   :  { %vm270_vm4 = vcmp.ge.f32.partialorder %v267_v29, 0.0  ;;  %v271_v31 = vmul.f32 0.05, %v267_v29 }
 0x213   :  { %v272_v32 = vsel %vm270_vm4, %v267_v29, %v271_v31 }
 0x214   :  { %602 = vmatmul.mubr.msk.f32.vlgmr.msra.gmra.mrb[2].mxu0 %vm196_vm3, %v272_v32 }
 0x215   :  { %623 = vmatprep.mubr.msk.f32.mxu0 %vm812_vm0, %v813_v1  ;;  %649 = vmatpush3.bf16.msra.mxu0 %v648_v38 }
 0x216   :  { %650 = vmatprep.subr.bf16.mxu0 %v811_v0 }
 0x219   :  { %652 = vmatpush3.bf16.msra.mxu0 %v651_v47 }
 0x2e7   :  { %v353_v40 = vpop.f32.mrb[2].mxu0 }
 0x2e8   :  { %v354_v41 = vadd.f32 %v547_v39, %v353_v40  ;;  %v603_v42 = vpop.f32.mrb[3].mxu0 }
 0x2ea   :  { %vm357_vm5 = vcmp.ge.f32.partialorder %v354_v41, 0.0  ;;  %v358_v43 = vmul.f32 0.05, %v354_v41 }
 0x2ec   :  { %v359_v44 = vsel %vm357_vm5, %v354_v41, %v358_v43 }
 0x2ed   :  { %613 = vmatmul.mubr.msk.f32.vlgmr.msra.gmra.mrb[2].mxu1 %vm196_vm3, %v359_v44 }
 0x3c0   :  { %v440_v49 = vpop.f32.mrb[2].mxu1 }
 0x3c1   :  { %v441_v50 = vadd.f32 %v549_v48, %v440_v49  ;;  %v614_v51 = vpop.f32.mrb[3].mxu1 }
 0x3c3   :  { %vm444_vm6 = vcmp.ge.f32.partialorder %v441_v50, 0.0  ;;  %v445_v52 = vmul.f32 0.05, %v441_v50 }
 0x3c5   :  { %v446_v53 = vsel %vm444_vm6, %v441_v50, %v445_v52 }
 0x3c6   :  { %624 = vmatmul.mubr.msk.f32.vlgmr.msra.gmra.mrb[4].mxu0 %vm196_vm3, %v446_v53 }
 0x499   :  { %v520_v54 = vpop.f32.mrb[4].mxu0 }
 0x49a   :  { %v625_v55 = vpop.f32.mrb[5].mxu0  ;;  %525 = vst.msk [vmem:[#allocation11] sm:$0xff] %vm524_vm7, %v520_v54 }
 0x49b   :  { %785 = shalt.err (!%p782_p2)
}
 0x49c   :  { %s786_s15 = scalar_lea.hbm %s1012_s10, 128 }
 0x49d   :  { %p787_p3 = scmp.ne.s32.totalorder %s1012_s10, %s786_s15  ;;  %p790_p4 = scmp.lt.u32.totalorder %s786_s15, %s1012_s10 }
 0x49f   :  { %p792_p5 = pnand %p790_p4, %p787_p3 }
 0x4a1   :  { %795 = shalt.err (!%p792_p5)
}
 0x4a2   :  { %535 = dma.vmem_to_hbm [thread:$0]  %s533_s8, 128, %s1012_s10, [#allocation4]  }
 0x4a3   :  { %802 = dma.done.wait [#allocation4], 128  }
 0x4a4   :  { %803 = vsyncadd [#allocation4], 4294967168 }
 0x4a5   :  { %539 = vsyncpa [#allocation3], 1 }
 0x4a6   :  { %540 = vsyncpa [#allocation6], 1 }
 0x4a7   :  { %541 = vsyncpa [#allocation9], 1 }
 0x4a8   :  { %542 = vsyncpa [#allocation4], 1 }

</bundles_post_ra>
